<compile_context>
chip_gen: v7x
topology: tpu7x:2x2x1
jax: 0.10.0
libtpu: 0.0.40
codegen_flags: <defaults>
</compile_context>

<pallas_src>
import jax
import jax.numpy as jnp
from jax.experimental import pallas as pl
from jax.experimental.pallas import tpu as pltpu


def cmix_kernel(x_ref, xprev_ref, xk_ref, wk_ref, wv_ref, o_ref, k_sc, acc_sc):
    # All grid-position reads happen at the top level of the kernel body (never
    # inside a pl.when closure).
    hj = pl.program_id(2)
    last_h = pl.num_programs(2) - 1
    # 0.0 for the first row tile of a batch (ZeroPad2d semantics), 1.0 otherwise.
    gate = (pl.program_id(1) > 0).astype(jnp.float32)

    # First hidden tile for this (batch, row-tile): do the token mix once,
    # cache it in VMEM scratch, and zero the fp32 accumulator.
    @pl.when(hj == 0)
    def _():
        x = x_ref[0].astype(jnp.float32)                       # (tq, C)
        # Last row of the 8-row slab preceding this tile == x[b, j*tq - 1].
        prev = xprev_ref[0].astype(jnp.float32)                # (8, C)
        row0 = prev[7:8, :] * gate                             # (1, C); zeros at t == 0
        xprev = jnp.concatenate([row0, x[:-1, :]], axis=0)     # fused time_shift(x)
        k = x + (xprev - x) * xk_ref[...].astype(jnp.float32)  # addcmul (fp32)
        k_sc[...] = k.astype(k_sc.dtype)
        acc_sc[...] = jnp.zeros_like(acc_sc)

    # h_tile = relu(k @ Wk[:, tile])**2 ; acc += h_tile @ Wv[tile, :]
    h = jnp.dot(k_sc[...], wk_ref[...], preferred_element_type=jnp.float32)
    h = jnp.maximum(h, 0.0)
    h = h * h                                                  # relu(.)**2 in fp32
    acc_sc[...] += jnp.dot(h.astype(wv_ref.dtype), wv_ref[...],
                           preferred_element_type=jnp.float32)

    @pl.when(hj == last_h)
    def _():
        o_ref[0] = acc_sc[...].astype(o_ref.dtype)


def _vmem_limit_bytes():
    # Raise the scoped-VMEM limit to ~7/8 of physical (v5e default is only 16 MiB);
    # cap to leave headroom for compiler scratch.
    try:
        cap = int(pltpu.get_tpu_info().vmem_capacity_bytes)
        return min(cap * 7 // 8, 112 * 1024 * 1024)
    except Exception:
        return None  # fall back to the compiler default (e.g. non-TPU / interpret)


def _pick_time_tile():
    # Arithmetic intensity of the weight stream is `tq` flops / weight byte.
    # v6e crossover ~655 flops/B -> tq~512..768; v7x ~311 but only 64 MiB VMEM
    # -> tq~384; v5e ~240 -> tq=256 is already balanced.
    try:
        cap = int(pltpu.get_tpu_info().vmem_capacity_bytes)
    except Exception:
        return 256
    if cap <= 80 * 1024 * 1024:   # v7x-class (64 MiB per TensorCore)
        return 384
    return 512                    # v6e-class (pass time_tile=256 explicitly on v5e)


def rwkv_cmix_x070(x, x_k, wk, wv, *, time_tile=None, hidden_tile=1024):
    """RWKV CMix forward.

    x:   (B, T, C) activations.
    x_k: (C,) or (1, C) token-mix coefficients.
    wk:  (C, 4C)  == key.weight.T
    wv:  (4C, C)  == value.weight.T
    Pass wk/wv already cast to the desired MXU dtype (bf16 recommended) — the
    cast is intentionally NOT done per call here (it would re-stream the full
    fp32 weights from HBM on every invocation).
    """
    B, T, C = x.shape
    Cw, H = wk.shape
    assert Cw == C and wv.shape == (H, C)
    assert wk.dtype == wv.dtype, "pre-cast wk/wv to the same MXU dtype once, outside the hot path"
    compute_dtype = wk.dtype
    assert T % 8 == 0, "fused time-shift tiling requires T to be a multiple of 8"

    if time_tile is None:
        time_tile = _pick_time_tile()
    tq = min(time_tile, T)
    assert T % tq == 0 and tq % 8 == 0

    # v7x megacore: keep >= 2 (b, j) "parallel" tiles so both TensorCores get work.
    while B * (T // tq) < 2 and tq > 8 and (tq // 2) % 8 == 0:
        tq //= 2

    th = min(hidden_tile, H)
    assert H % th == 0 and (th % 128 == 0 or th == H)
    tq8 = tq // 8

    xk2d = jnp.asarray(x_k, jnp.float32).reshape(1, C)

    grid = (B, T // tq, H // th)

    # Cost estimate: two matmuls of (B*T) x C x H; activations + outputs + xprev
    # slabs once; weights once if resident (th == H) else once per row tile.
    n_row_tiles = B * (T // tq)
    w_bytes = (wk.size + wv.size) * jnp.dtype(compute_dtype).itemsize
    x_bytes = x.size * x.dtype.itemsize
    slab_bytes = n_row_tiles * 8 * C * x.dtype.itemsize
    out_bytes = B * T * C * x.dtype.itemsize
    cost = pl.CostEstimate(
        flops=4 * B * T * C * H,
        transcendentals=0,
        bytes_accessed=x_bytes + slab_bytes + out_bytes
                       + (w_bytes if th == H else n_row_tiles * w_bytes),
    )

    out = pl.pallas_call(
        cmix_kernel,
        out_shape=jax.ShapeDtypeStruct((B, T, C), x.dtype),
        grid_spec=pltpu.PrefetchScalarGridSpec(
            num_scalar_prefetch=0,
            grid=grid,
            in_specs=[
                # current (tq)-row time tile of x
                pl.BlockSpec((1, tq, C), lambda b, j, h: (b, j, 0)),
                # 8-row slab of x whose last row is x[b, j*tq - 1] (clamped at j == 0)
                pl.BlockSpec((1, 8, C),
                             lambda b, j, h: (b, jnp.maximum(j * tq8 - 1, 0), 0)),
                # x_k, broadcast over all rows
                pl.BlockSpec((1, C), lambda b, j, h: (0, 0)),
                # key / value weight tiles along the hidden dimension
                pl.BlockSpec((C, th), lambda b, j, h: (0, h)),
                pl.BlockSpec((th, C), lambda b, j, h: (h, 0)),
            ],
            out_specs=pl.BlockSpec((1, tq, C), lambda b, j, h: (b, j, 0)),
            scratch_shapes=[
                pltpu.VMEM((tq, C), compute_dtype),   # cached token-mixed k
                pltpu.VMEM((tq, C), jnp.float32),     # fp32 output accumulator
            ],
        ),
        compiler_params=pltpu.CompilerParams(
            dimension_semantics=("parallel", "parallel", "arbitrary"),
            vmem_limit_bytes=_vmem_limit_bytes(),
        ),
        cost_estimate=cost,
    )(x, x, xk2d, wk_c := wk, wv_c := wv)
    del wk_c, wv_c
    return out


def reference(x, x_k, wk, wv):
    B, T, C = x.shape
    xprev = jnp.pad(x, ((0, 0), (1, 0), (0, 0)))[:, :T, :]
    k = x + (xprev - x) * jnp.asarray(x_k, jnp.float32).reshape(1, 1, C)
    h = jnp.maximum(jnp.matmul(k, wk, precision=jax.lax.Precision.HIGHEST), 0.0) ** 2
    return jnp.matmul(h, wv, precision=jax.lax.Precision.HIGHEST)


if __name__ == "__main__":
    # ---- Test 1: small config consistent with the module (n_embd=32, hidden=4*32). ----
    B, T, C = 2, 8, 32
    H = 4 * C
    num_hidden_groups, inner_group_num = 2, 2
    group_id, loops_per_group = 1, 2
    num_all_layers = num_hidden_groups * inner_group_num

    # x_k init exactly as in __init__:
    ratio_1_to_almost0 = 1.0 - group_id * loops_per_group / num_all_layers
    ddd = jnp.arange(C, dtype=jnp.float32) / C
    x_k = (1.0 - jnp.power(ddd, ratio_1_to_almost0 ** 4)).astype(jnp.float32)

    key0 = jax.random.PRNGKey(0)
    k_x, k_wk, k_wv = jax.random.split(key0, 3)

    bound = 0.5 / (C ** 0.5)
    wk = jax.random.uniform(k_wk, (C, H), jnp.float32, -bound, bound)   # key.weight.T
    # Module zero-inits value.weight; use a small non-zero init so the output is
    # non-trivial (forward semantics unchanged).
    wv = jax.random.uniform(k_wv, (H, C), jnp.float32, -0.01, 0.01)     # value.weight.T
    x = jax.random.normal(k_x, (B, T, C), jnp.float32)

    ref = reference(x, x_k, wk, wv)

    # fp32 compute path (weights passed in fp32) must match the fp32 reference.
    out_f32 = jax.block_until_ready(rwkv_cmix_x070(x, x_k, wk, wv))
    assert out_f32.shape == (B, T, C)
    assert jnp.allclose(out_f32, ref, atol=1e-4, rtol=1e-4)

    # bf16 fast path: weights pre-cast ONCE outside the call path (perf item).
    wk_bf16 = jax.block_until_ready(wk.astype(jnp.bfloat16))
    wv_bf16 = jax.block_until_ready(wv.astype(jnp.bfloat16))
    out_bf16 = jax.block_until_ready(rwkv_cmix_x070(x, x_k, wk_bf16, wv_bf16))
    assert out_bf16.shape == (B, T, C)
    assert jnp.allclose(out_bf16, ref, atol=5e-3, rtol=5e-2)

    # ---- Test 2: exercise the real tiled paths (multiple row tiles -> time-shift
    # slab + gate; multiple hidden tiles -> fp32 accumulator; full 128-lane C). ----
    B2, T2, C2 = 2, 64, 128
    H2 = 4 * C2
    k_x2, k_wk2, k_wv2, k_xk2 = jax.random.split(jax.random.PRNGKey(1), 4)
    x2 = jax.random.normal(k_x2, (B2, T2, C2), jnp.float32)
    xk2 = jax.random.uniform(k_xk2, (C2,), jnp.float32)
    wk2 = jax.random.normal(k_wk2, (C2, H2), jnp.float32) * (0.5 / C2 ** 0.5)
    wv2 = jax.random.normal(k_wv2, (H2, C2), jnp.float32) * 0.02

    ref2 = reference(x2, xk2, wk2, wv2)
    out2 = jax.block_until_ready(
        rwkv_cmix_x070(x2, xk2, wk2, wv2, time_tile=16, hidden_tile=128))
    assert out2.shape == (B2, T2, C2)
    assert jnp.allclose(out2, ref2, atol=1e-3, rtol=1e-3)

    print("KERNEL_OK")
</pallas_src>

<mosaic_0001>
module attributes {stable_mosaic.version = 11 : i64} {
  func.func @cmix_kernel(%arg0: i32, %arg1: i32, %arg2: i32, %arg3: memref<1x8x32xf32, #tpu.memory_space<vmem>>, %arg4: memref<1x8x32xf32, #tpu.memory_space<vmem>>, %arg5: memref<1x32xf32, #tpu.memory_space<vmem>>, %arg6: memref<32x128xf32, #tpu.memory_space<vmem>>, %arg7: memref<128x32xf32, #tpu.memory_space<vmem>>, %arg8: memref<1x8x32xf32, #tpu.memory_space<vmem>>, %arg9: memref<8x32xf32, #tpu.memory_space<vmem>>, %arg10: memref<8x32xf32, #tpu.memory_space<vmem>>) attributes {dimension_semantics = [#tpu.dimension_semantics<parallel>, #tpu.dimension_semantics<parallel>, #tpu.dimension_semantics<arbitrary>], iteration_bounds = array<i64: 2, 1, 1>, scalar_prefetch = 0 : i64, scratch_operands = 2 : i64, tpu.core_type = #tpu.core_type<tc>, window_params = [{transform_indices = @transform_0, window_bounds = array<i64: 1, 8, 32>}, {transform_indices = @transform_1, window_bounds = array<i64: 1, 8, 32>}, {pipeline_mode = #tpu.pipeline_mode<synchronous>, transform_indices = @transform_2, window_bounds = array<i64: 1, 32>}, {transform_indices = @transform_3, window_bounds = array<i64: 32, 128>}, {transform_indices = @transform_4, window_bounds = array<i64: 128, 32>}, {transform_indices = @transform_5, window_bounds = array<i64: 1, 8, 32>}]} {
    %c0_i32 = arith.constant 0 : i32
    %0 = arith.cmpi sgt, %arg1, %c0_i32 : i32
    %1 = arith.extui %0 : i1 to i32
    %2 = arith.sitofp %1 : i32 to f32
    %c0_i32_0 = arith.constant 0 : i32
    %3 = arith.cmpi eq, %arg2, %c0_i32_0 : i32
    %4 = arith.extui %3 : i1 to i32
    %c0_i32_1 = arith.constant 0 : i32
    %5 = arith.cmpi ne, %4, %c0_i32_1 : i32
    scf.if %5 {
      %c0_15 = arith.constant 0 : index
      %c0_16 = arith.constant 0 : index
      %c0_17 = arith.constant 0 : index
      %20 = vector.load %arg3[%c0_15, %c0_16, %c0_17] : memref<1x8x32xf32, #tpu.memory_space<vmem>>, vector<1x8x32xf32>
      %21 = vector.shape_cast %20 : vector<1x8x32xf32> to vector<8x32xf32>
      %c0_18 = arith.constant 0 : index
      %c0_19 = arith.constant 0 : index
      %c0_20 = arith.constant 0 : index
      %22 = vector.load %arg4[%c0_18, %c0_19, %c0_20] : memref<1x8x32xf32, #tpu.memory_space<vmem>>, vector<1x8x32xf32>
      %23 = vector.shape_cast %22 : vector<1x8x32xf32> to vector<8x32xf32>
      %24 = vector.extract_strided_slice %23 {offsets = [7, 0], sizes = [1, 32], strides = [1, 1]} : vector<8x32xf32> to vector<1x32xf32>
      %25 = vector.broadcast %2 : f32 to vector<1x32xf32>
      %26 = arith.mulf %24, %25 : vector<1x32xf32>
      %27 = vector.extract_strided_slice %21 {offsets = [0, 0], sizes = [7, 32], strides = [1, 1]} : vector<8x32xf32> to vector<7x32xf32>
      %28 = tpu.concatenate %26, %27 in 0 : vector<1x32xf32>, vector<7x32xf32> -> vector<8x32xf32>
      %29 = arith.subf %28, %21 : vector<8x32xf32>
      %c0_21 = arith.constant 0 : index
      %c0_22 = arith.constant 0 : index
      %30 = vector.load %arg5[%c0_21, %c0_22] : memref<1x32xf32, #tpu.memory_space<vmem>>, vector<1x32xf32>
      %31 = vector.broadcast %30 : vector<1x32xf32> to vector<8x32xf32>
      %32 = arith.mulf %29, %31 : vector<8x32xf32>
      %33 = arith.addf %21, %32 : vector<8x32xf32>
      %c0_23 = arith.constant 0 : index
      %c0_24 = arith.constant 0 : index
      %34 = vector.load %arg9[%c0_23, %c0_24] : memref<8x32xf32, #tpu.memory_space<vmem>>, vector<8x32xf32>
      tpu.vector_store %arg9[%c0_23, %c0_24], %33 {strides = array<i32>} : memref<8x32xf32, #tpu.memory_space<vmem>>, vector<8x32xf32>,
      %cst_25 = arith.constant 0.000000e+00 : f32
      %35 = vector.broadcast %cst_25 : f32 to vector<8x32xf32>
      %c0_26 = arith.constant 0 : index
      %c0_27 = arith.constant 0 : index
      %36 = vector.load %arg10[%c0_26, %c0_27] : memref<8x32xf32, #tpu.memory_space<vmem>>, vector<8x32xf32>
      tpu.vector_store %arg10[%c0_26, %c0_27], %35 {strides = array<i32>} : memref<8x32xf32, #tpu.memory_space<vmem>>, vector<8x32xf32>,
    } else {
    }
    %c0 = arith.constant 0 : index
    %c0_2 = arith.constant 0 : index
    %6 = vector.load %arg9[%c0, %c0_2] : memref<8x32xf32, #tpu.memory_space<vmem>>, vector<8x32xf32>
    %c0_3 = arith.constant 0 : index
    %c0_4 = arith.constant 0 : index
    %7 = vector.load %arg6[%c0_3, %c0_4] : memref<32x128xf32, #tpu.memory_space<vmem>>, vector<32x128xf32>
    %cst = arith.constant dense<0.000000e+00> : vector<8x128xf32>
    %8 = tpu.matmul %6, %7, %cst {dimension_numbers = #tpu.dot_dimension_numbers<[1], [0], [0], [1], [0, 0, 1, 1], [], []>} : vector<8x32xf32>, vector<32x128xf32>, vector<8x128xf32> -> vector<8x128xf32>
    %cst_5 = arith.constant 0.000000e+00 : f32
    %9 = vector.broadcast %cst_5 : f32 to vector<8x128xf32>
    %10 = arith.maximumf %8, %9 : vector<8x128xf32>
    %11 = arith.mulf %10, %10 : vector<8x128xf32>
    %c0_6 = arith.constant 0 : index
    %c0_7 = arith.constant 0 : index
    %12 = vector.load %arg10[%c0_6, %c0_7] : memref<8x32xf32, #tpu.memory_space<vmem>>, vector<8x32xf32>
    %c0_8 = arith.constant 0 : index
    %c0_9 = arith.constant 0 : index
    %13 = vector.load %arg7[%c0_8, %c0_9] : memref<128x32xf32, #tpu.memory_space<vmem>>, vector<128x32xf32>
    %cst_10 = arith.constant dense<0.000000e+00> : vector<8x32xf32>
    %14 = tpu.matmul %11, %13, %cst_10 {dimension_numbers = #tpu.dot_dimension_numbers<[1], [0], [0], [1], [0, 0, 1, 1], [], []>} : vector<8x128xf32>, vector<128x32xf32>, vector<8x32xf32> -> vector<8x32xf32>
    %15 = arith.addf %12, %14 : vector<8x32xf32>
    %c0_11 = arith.constant 0 : index
    %c0_12 = arith.constant 0 : index
    %16 = vector.load %arg10[%c0_11, %c0_12] : memref<8x32xf32, #tpu.memory_space<vmem>>, vector<8x32xf32>
    tpu.vector_store %arg10[%c0_11, %c0_12], %15 {strides = array<i32>} : memref<8x32xf32, #tpu.memory_space<vmem>>, vector<8x32xf32>,
    %c0_i32_13 = arith.constant 0 : i32
    %17 = arith.cmpi eq, %arg2, %c0_i32_13 : i32
    %18 = arith.extui %17 : i1 to i32
    %c0_i32_14 = arith.constant 0 : i32
    %19 = arith.cmpi ne, %18, %c0_i32_14 : i32
    scf.if %19 {
      %c0_15 = arith.constant 0 : index
      %c0_16 = arith.constant 0 : index
      %20 = vector.load %arg10[%c0_15, %c0_16] : memref<8x32xf32, #tpu.memory_space<vmem>>, vector<8x32xf32>
      %c0_17 = arith.constant 0 : index
      %c0_18 = arith.constant 0 : index
      %c0_19 = arith.constant 0 : index
      %21 = vector.load %arg8[%c0_17, %c0_18, %c0_19] : memref<1x8x32xf32, #tpu.memory_space<vmem>>, vector<1x8x32xf32>
      %22 = vector.shape_cast %21 : vector<1x8x32xf32> to vector<8x32xf32>
      %23 = vector.shape_cast %20 : vector<8x32xf32> to vector<1x8x32xf32>
      tpu.vector_store %arg8[%c0_17, %c0_18, %c0_19], %23 {strides = array<i32>} : memref<1x8x32xf32, #tpu.memory_space<vmem>>, vector<1x8x32xf32>,
    } else {
    }
    return
  }
  func.func @transform_0(%arg0: i32, %arg1: i32, %arg2: i32) -> (i32, i32, i32) {
    %c0_i32 = arith.constant 0 : i32
    %c0_i32_0 = arith.constant 0 : i32
    return %arg0, %arg1, %c0_i32 : i32, i32, i32
  }
  func.func @transform_1(%arg0: i32, %arg1: i32, %arg2: i32) -> (i32, i32, i32) {
    %c1_i32 = arith.constant 1 : i32
    %0 = arith.muli %arg1, %c1_i32 : i32
    %c1_i32_0 = arith.constant 1 : i32
    %1 = arith.subi %0, %c1_i32_0 : i32
    %c0_i32 = arith.constant 0 : i32
    %2 = arith.maxsi %1, %c0_i32 : i32
    %c0_i32_1 = arith.constant 0 : i32
    %c0_i32_2 = arith.constant 0 : i32
    return %arg0, %2, %c0_i32_1 : i32, i32, i32
  }
  func.func @transform_2(%arg0: i32, %arg1: i32, %arg2: i32) -> (i32, i32) {
    %c0_i32 = arith.constant 0 : i32
    %c0_i32_0 = arith.constant 0 : i32
    %c0_i32_1 = arith.constant 0 : i32
    return %c0_i32, %c0_i32_0 : i32, i32
  }
  func.func @transform_3(%arg0: i32, %arg1: i32, %arg2: i32) -> (i32, i32) {
    %c0_i32 = arith.constant 0 : i32
    %c0_i32_0 = arith.constant 0 : i32
    return %c0_i32, %arg2 : i32, i32
  }
  func.func @transform_4(%arg0: i32, %arg1: i32, %arg2: i32) -> (i32, i32) {
    %c0_i32 = arith.constant 0 : i32
    %c0_i32_0 = arith.constant 0 : i32
    return %arg2, %c0_i32 : i32, i32
  }
  func.func @transform_5(%arg0: i32, %arg1: i32, %arg2: i32) -> (i32, i32, i32) {
    %c0_i32 = arith.constant 0 : i32
    %c0_i32_0 = arith.constant 0 : i32
    return %arg0, %arg1, %c0_i32 : i32, i32, i32
  }
}

</mosaic_0001>

<bundles_post_ra>
// kernel: tpu_custom_call.1
= control target key start
LH: loop header
LB: loop body
LE: loop exit
PB: predicated region body
PF: predicated region fallthrough
CT: control target
= control target key end

     0   :  { %10 = vsyncpa [#allocation5], 0  ;;  %s1160_s0 = inlined_call_operand.vmem [shape: f32[2,8,32], index: 0, kind: input, shape index: {}]   ;;  %s1161_s1 = inlined_call_operand.vmem [shape: f32[2,8,32], index: 1, kind: input, shape index: {}]   ;;  %s1162_s2 = inlined_call_operand.vmem [shape: f32[1,32], index: 2, kind: input, shape index: {}]   ;;  %s1163_s3 = inlined_call_operand.vmem [shape: f32[32,128], index: 3, kind: input, shape index: {}]   ;;  %s1164_s4 = inlined_call_operand.vmem [shape: f32[128,32], index: 4, kind: input, shape index: {}]   ;;  %s1165_s5 = inlined_call_operand.hbm [shape: f32[2,8,32], index: 5, kind: output, shape index: {}]  }
   0x1   :  { %12 = vsyncpa [#allocation5 + $0x1], 0  ;;  %s967_s18 = smov 0   ;;  %s969_s19 = smov 0  }
   0x2   :  { %s971_s20 = smov 0   ;;  %s973_s21 = smov 0  }
   0x3   :  { %s975_s22 = smov 0   ;;  %s977_s23 = smov 0  }
   0x4 LB: > { %s681_s24 = sadd.s32 4294967295, %s931_s23   ;;  %s682_s25 = sadd.s32 4294967294, %s931_s23   ;;  %s931_s23 = sphi %s977_s23, %s18_s23   ;;  %s927_s22 = sphi %s975_s22, %s1172_s22   ;;  %s923_s21 = sphi %s973_s21, %s1171_s21   ;;  %s919_s20 = sphi %s971_s20, %s1170_s20   ;;  %s915_s19 = sphi %s969_s19, %s1169_s19   ;;  %s911_s18 = sphi %s967_s18, %s1168_s18  }
   0x5   : > { %s37_s26 = sadd.s32 1, %s927_s22  ;;  %s181_s27 = sadd.s32 1, %s919_s20 }
   0x6   : > { %p39_p0 = scmp.ge.s32.totalorder %s37_s26, 2  ;;  %p191_p1 = scmp.ne.s32.totalorder %s919_s20, %s915_s19 }
   0x7   : > { %p192_p2 = scmp.eq.s32.totalorder %s681_s24, 1  ;;  %p197_p3 = scmp.ne.s32.totalorder %s915_s19, %s911_s18 }
   0x8   : > { %s1174_s26 = smov (%p39_p0, %s37_s26), 0  ;;  %p198_p5 = scmp.eq.s32.totalorder %s682_s25, 1 }
   0x9   : > { %p1007_p4 = por %p192_p2, %p191_p1  ;;  %s176_s29 = ssub.s32 %s927_s22, %s1174_s26 }
   0xa   : > { %p687_p6 = scmp.ge.s32.totalorder %s931_s23, 1  ;;  %p179_p7 = scmp.eq.s32.totalorder %s176_s29, 0 }
   0xb   : > { %p1014_p8 = por %p198_p5, %p197_p3  ;;  %p261_p9 = scmp.lt.s32.totalorder %s931_s23, 3 }
   0xc   : > { %s1020_s6 = scalar_select %p179_p7, %s919_s20, %s181_s27  }
   0xd   : > { %p262_p10 = pnand %p687_p6, %p261_p9 }
   0xe   : > { %v373_v0 = vld [vmem:[%s1163_s3] sm:$0xff] (!%p262_p10)  ;;  %v374_v1 = vld [vmem:[%s1163_s3 + $0x8] sm:$0xff] (!%p262_p10)  ;;  %v375_v2 = vld [vmem:[%s1163_s3 + $0x10] sm:$0xff] (!%p262_p10)  ;;  %p310_p11 = scmp.lt.s32.totalorder (!%p262_p10), %s923_s21, 1  ;;  %v933_v3 = vmov (!%p262_p10), 0.0|0.0   ;;  %vm369_vm0 = vcmask (!%p262_p10), 261120  }
   0xf   : > { %265 = sbr.rel (%p262_p10) target bundleno = 499 (0x1f3), region = 40  ;;  %765 = vmatprep.subr.bf16.mxu0 (!%p262_p10), %v933_v3  ;;  %v766_v4 = vpack.c.bf16 (!%p262_p10), %v374_v1, %v373_v0  ;;  %v376_v5 = vld [vmem:[%s1163_s3 + $0x18] sm:$0xff] (!%p262_p10)  ;;  %771 = vmatprep.subr.bf16.mxu1 (!%p262_p10), %v933_v3  ;;  %v934_v6 = vmov (!%p262_p10), 0.0   ;;  %vm935_vm1 = vmmov (!%p262_p10), 0   ;;  %v454_v7 = vld [vmem:[%s1164_s4] sm:$0xff] (!%p262_p10)  ;;  %v455_v8 = vld [vmem:[%s1164_s4 + $0x8] sm:$0xff] (!%p262_p10) }
  0x10   : > { %371 = vst.msk [vmem:[#allocation3] sm:$0xff] (!%p262_p10), %vm369_vm0, %v934_v6  ;;  %727 = vmatprep.mubr.msk.f32.mxu0 (!%p262_p10), %vm935_vm1, %v934_v6  ;;  %v456_v9 = vld [vmem:[%s1164_s4 + $0x10] sm:$0xff] (!%p262_p10)  ;;  %762 = vmatprep.mubr.msk.f32.mxu1 (!%p262_p10), %vm935_vm1, %v934_v6  ;;  %v769_v10 = vpack.c.bf16 (!%p262_p10), %v376_v5, %v375_v2  ;;  %v772_v11 = vpack.c.bf16 (!%p262_p10), %v455_v8, %v454_v7  ;;  %v457_v12 = vld [vmem:[%s1164_s4 + $0x18] sm:$0xff] (!%p262_p10)  ;;  %v458_v14 = vld [vmem:[%s1164_s4 + $0x20] sm:$0xff] (!%p262_p10)  ;;  %vm357_vm2 = vcmask (!%p262_p10), 1040384   ;;  %s694_s14 = sshll.u32 (!%p262_p10), %s923_s21, 7 }
  0x11   : > { %767 = vmatpush3.bf16.msra.mxu0 (!%p262_p10), %v766_v4  ;;  %v775_v13 = vpack.c.bf16 (!%p262_p10), %v457_v12, %v456_v9  ;;  %v459_v17 = vld [vmem:[%s1164_s4 + $0x28] sm:$0xff] (!%p262_p10)  ;;  %v460_v22 = vld [vmem:[%s1164_s4 + $0x30] sm:$0xff] (!%p262_p10)  ;;  %v461_v23 = vld [vmem:[%s1164_s4 + $0x38] sm:$0xff] (!%p262_p10) }
  0x12   : > { %768 = vmatprep.subr.bf16.mxu0 (!%p262_p10), %v933_v3  ;;  %773 = vmatpush3.bf16.msra.mxu1 (!%p262_p10), %v772_v11  ;;  %v778_v21 = vpack.c.bf16 (!%p262_p10), %v459_v17, %v458_v14  ;;  %v691_v25 = vld [vmem:[%s1162_s2] ss:$0 sm:$0xff] (!%p262_p10)  ;;  %v781_v27 = vpack.c.bf16 (!%p262_p10), %v461_v23, %v460_v22  ;;  %v463_v30 = vld [vmem:[%s1164_s4 + $0x48] sm:$0xff] (!%p262_p10)  ;;  %v464_v33 = vld [vmem:[%s1164_s4 + $0x50] sm:$0xff] (!%p262_p10) }
  0x13   : > { %774 = vmatprep.subr.bf16.mxu1 (!%p262_p10), %v933_v3  ;;  %v462_v29 = vld [vmem:[%s1164_s4 + $0x40] sm:$0xff] (!%p262_p10)  ;;  %v465_v34 = vld [vmem:[%s1164_s4 + $0x58] sm:$0xff] (!%p262_p10)  ;;  %v467_v37 = vld [vmem:[%s1164_s4 + $0x68] sm:$0xff] (!%p262_p10) }
  0x14   : > { %v784_v32 = vpack.c.bf16 (!%p262_p10), %v463_v30, %v462_v29  ;;  %v787_v35 = vpack.c.bf16 (!%p262_p10), %v465_v34, %v464_v33  ;;  %v466_v36 = vld [vmem:[%s1164_s4 + $0x60] sm:$0xff] (!%p262_p10)  ;;  %v468_v40 = vld [vmem:[%s1164_s4 + $0x70] sm:$0xff] (!%p262_p10)  ;;  %v469_v41 = vld [vmem:[%s1164_s4 + $0x78] sm:$0xff] (!%p262_p10) }
  0x15   : > { %770 = vmatpush3.bf16.msra.mxu0 (!%p262_p10), %v769_v10  ;;  %v790_v39 = vpack.c.bf16 (!%p262_p10), %v467_v37, %v466_v36  ;;  %v793_v42 = vpack.c.bf16 (!%p262_p10), %v469_v41, %v468_v40 }
  0x16   : > { %s311_s15 = scalar_select %p310_p11, %s923_s21, 1  ;;  %776 = vmatpush3.bf16.msra.mxu1 %v775_v13 }
  0x17   : > { %777 = vmatprep.subr.bf16.mxu1 %v933_v3  ;;  %v453_v47 = vld [vmem:[#allocation3] sm:$0xff]  ;;  %s936_s21 = smov [#allocation4]  }
  0x18   : > { %s689_s9 = sshll.u32 %s311_s15, 3  ;;  %s1112_s15 = scalar_lea.hbm %s1165_s5, %s694_s14 }
  0x19   : > { %s316_s12 = scalar_lea.vmem %s1160_s0, %s689_s9  ;;  %s326_s16 = scalar_lea.vmem %s1161_s1, %s689_s9 }
  0x1a   : > { %v347_v15 = vld [vmem:[%s316_s12] sm:$0xff]  ;;  %779 = vmatpush3.bf16.msra.mxu1 %v778_v21  ;;  %s307_s12 = sand.u32 1, %s915_s19   ;;  %s857_s7 = sshll.u32 %s936_s21, 4  ;;  %s858_s7 = int_to_ptr.vmem [resolvable:$false] %s857_s7 }
  0x1b   : > { %v348_v16 = vld [vmem:[%s326_s16] sm:$0xff]  ;;  %v355_v19 = vrot.slane %v347_v15, 7  ;;  %780 = vmatprep.subr.bf16.mxu1 %v933_v3  ;;  %s688_s13 = sshll.u32 %s307_s12, 3  ;;  %s548_s27 = scalar_lea.sflag [#allocation5], %s307_s12 }
  0x1c   : > { %v350_v18 = vmul.f32 0.0, %v348_v16  ;;  %s309_s16 = scalar_lea.vmem [#allocation4], %s688_s13  ;;  %s859_s8 = scalar_lea.vmem %s858_s7, 256 }
  0x1d   : > { %s562_s17 = sshll.u32 %s309_s16, 4  ;;  %s1114_s17 = int_to_ptr.vmem [resolvable:$true] %s562_s17 }
  0x1e   : > { %v352_v20 = vrot.slane %v350_v18, 7  ;;  %782 = vmatpush3.bf16.msra.mxu1 %v781_v27  ;;  %s853_s29 = scalar_lea.vmem %s1114_s17, 128  ;;  %p860_p1 = scmp.lt.s32.totalorder %s1114_s17, %s858_s7 }
  0x1f   : > { %783 = vmatprep.subr.bf16.mxu1 %v933_v3  ;;  %p854_p12 = scmp.ne.s32.totalorder %s1114_s17, %s853_s29  ;;  %p861_p2 = scmp.lt.s32.totalorder %s859_s8, %s853_s29 }
  0x20   : > { %v358_v24 = vsel %vm357_vm2, %v352_v20, %v355_v19 }
  0x21   : > { %v359_v26 = vsub.f32 %v358_v24, %v347_v15  ;;  %p855_p13 = pnand %p854_p12, %p1007_p4  ;;  %p862_p3 = por %p861_p2, %p860_p1 }
  0x22   : > { %785 = vmatpush3.bf16.msra.mxu1 %v784_v32 }
  0x23   : > { %v367_v28 = vmul.f32 %v691_v25, %v359_v26  ;;  %786 = vmatprep.subr.bf16.mxu1 %v933_v3  ;;  %p856_p0 = pneg %p855_p13 }
  0x25   : > { %v368_v31 = vadd.f32 %v367_v28, %v347_v15  ;;  %p863_p5 = pnand %p862_p3, %p856_p0 }
  0x26   : > { %788 = vmatpush3.bf16.msra.mxu1 %v787_v35 }
  0x27   : > { %370 = vst.msk [vmem:[#allocation2] sm:$0xff] %vm369_vm0, %v368_v31  ;;  %789 = vmatprep.subr.bf16.mxu1 %v933_v3 }
  0x2a   : > { %791 = vmatpush3.bf16.msra.mxu1 %v790_v39 }
  0x2b   : > { %792 = vmatprep.subr.bf16.mxu1 %v933_v3 }
  0x2e   : > { %v372_v38 = vld [vmem:[#allocation2] sm:$0xff]  ;;  %794 = vmatpush3.bf16.msra.mxu1 %v793_v42 }
  0x2f   : > { %728 = vmatmul.mubr.msk.f32.vlgmr.msra.gmra.mrb[0].mxu0 %vm369_vm0, %v372_v38 }
 0x102   : > { %v447_v43 = vpop.f32.mrb[0].mxu0 }
 0x103   : > { %v451_v44 = vmax.f32 %v447_v43, 0.0  ;;  %v729_v45 = vpop.f32.mrb[1].mxu0 }
 0x105   : > { %v452_v46 = vmul.f32 %v451_v44, %v451_v44 }
 0x107   : > { %763 = vmatmul.mubr.f32.vlgmr.msra.gmra.mrb[0].mxu1 %v452_v46 }
 0x1da   : > { %v536_v48 = vpop.f32.mrb[0].mxu1 }
 0x1db   : > { %v540_v49 = vadd.f32 %v536_v48, %v453_v47  ;;  %v764_v50 = vpop.f32.mrb[1].mxu1 }
 0x1dd   : > { %541 = vst.msk [vmem:[#allocation3] sm:$0xff] %vm369_vm0, %v540_v49 }
 0x1e4   : > { %v545_v51 = vld [vmem:[#allocation3] sm:$0xff] }
 0x1e5   : > { %546 = vst.msk [vmem:[%s309_s16] sm:$0xff] %vm369_vm0, %v545_v51 }
 0x1e6   : > { %866 = shalt.err (!%p863_p5)
}
 0x1e7   : > { %s867_s9 = scalar_lea.hbm %s1112_s15, 128  ;;  %s871_s12 = scalar_lea.hbm %s1165_s5, 256 }
 0x1e8   : > { %p868_p6 = scmp.ne.s32.totalorder %s1112_s15, %s867_s9  ;;  %p872_p10 = scmp.lt.u32.totalorder %s1112_s15, %s1165_s5 }
 0x1e9   : > { %p873_p11 = scmp.lt.u32.totalorder %s871_s12, %s867_s9  ;;  %p875_p13 = scmp.lt.u32.totalorder %s867_s9, %s1112_s15 }
 0x1ea   : > { %p869_p7 = pnand %p868_p6, %p1007_p4 }
 0x1eb   : > { %p874_p12 = por %p873_p11, %p872_p10 }
 0x1ec   : > { %p870_p9 = pneg %p869_p7 }
 0x1ed   : > { %p876_p0 = por %p875_p13, %p874_p12 }
 0x1ef   : > { %p877_p1 = pnand %p876_p0, %p870_p9 }
 0x1f1   : > { %880 = shalt.err (!%p877_p1)
}
 0x1f2   : > { %795 = dma.vmem_to_hbm [thread:$0]  (%p1007_p4), %s1114_s17, 128, %s1112_s15, %s548_s27  }
 0x1f3 PF: > { %p801_p2 = scmp.ge.s32.totalorder %s931_s23, 2  ;;  %s574_s16 = sand.u32 1, %s911_s18  }
 0x1f4   : > { %s575_s24 = scalar_lea.sflag [#allocation5], %s574_s16 }
 0x1f5   : > { %p798_p3 = pnand %p801_p2, %p1014_p8 }
 0x1f7   : > { %906 = dma.done.wait (!%p798_p3), %s575_s24, 128  }
 0x1f8   : > { %908 = vsyncadd (!%p798_p3), %s575_s24, 4294967168  ;;  %s18_s23 = sadd.s32 1, %s931_s23   ;;  %s1168_s18 = smov %s915_s19 }
 0x1f9   : > { %p15_p5 = scmp.ge.s32.totalorder %s18_s23, 4   ;;  %s1169_s19 = smov %s919_s20 }
 0x1fa   : > { %s1170_s20 = smov %s1020_s6  ;;  %s1171_s21 = smov %s927_s22 }
 0x1fb   : > { %s1172_s22 = smov %s1174_s26  ;;  %17 = sbr.rel (!%p15_p5) target bundleno = 4 (0x4), region = 92 }
 0x202   :  { %580 = vsyncpa [#allocation5], 1 }
 0x203   :  { %582 = vsyncpa [#allocation5 + $0x1], 1 }

</bundles_post_ra>
